<compile_context>
chip_gen: v6e
topology: v6e:2x2x1
jax: 0.10.0
libtpu: 0.0.40
codegen_flags: <defaults>
</compile_context>

<pallas_src>
import math

import jax
import jax.numpy as jnp
from jax.experimental import pallas as pl
from jax.experimental.pallas import tpu as pltpu


def _round_up(x, m):
    return ((x + m - 1) // m) * m


def _choose_batch_tile(batch, t_pad, d_pad):
    """Pick rows-per-grid-step (tb).

    * bf16 x block <= ~3 MiB so the live f32 intermediates (~6x the block) plus
      the double-buffered input DMA stay inside v7x's 64 MiB VMEM.
    * M = tb * t_pad aligned to a multiple of 256 (MXU depth) when possible.
    * Keep >= 2 grid steps when the batch allows (v7x has 2 TensorCores).
    """
    bytes_per_row = t_pad * d_pad * 2                      # bf16 x per batch element
    tb = max(8, min(512, (3 * 1024 * 1024) // max(bytes_per_row, 1)))
    step = max(8, 256 // math.gcd(t_pad, 256))             # tb multiple -> M % 256 == 0
    tb = (tb // step) * step if tb >= step else (tb // 8) * 8
    tb = max(8, tb)
    b8 = _round_up(batch, 8)
    tb = min(tb, b8)
    if b8 // tb < 2 and b8 >= 16:                          # >=2 steps for v7x megacore
        tb = max(8, ((b8 // 2) // 8) * 8)
    return tb


def _context_attention_kernel(x_ref, mask_ref, w_ref, b_ref, s_ref, e_ref, o_ref):
    # x_ref   : (TB, T, Dp) bf16   batch tile of the (padded) input
    # mask_ref: (TB, T, 1)  f32    additive padding mask (0 / -1e10 / -2e10)
    # w_ref   : (Dp, Dp)    bf16   padded attention_net weight, transposed
    # b_ref   : (1, Dp)     f32    padded bias
    # s_ref   : (Dp, Hl)    bf16   per-head context vectors, one lane per head
    # e_ref   : (Hl, Dp)    f32    0/1 head -> feature broadcast matrix
    # o_ref   : (TB, Dp)    f32    pooled output tile
    tb, t, dp = x_ref.shape
    hl = s_ref.shape[1]
    m_rows = tb * t

    x3 = x_ref[...]                                     # (TB, T, Dp) bf16
    x2 = x3.reshape(m_rows, dp)                         # free re-view (T % 8 == 0)

    # attention_net(x) -> tanh : one big bf16 MXU matmul (M rows), f32 accumulate.
    attn = jnp.tanh(
        jnp.dot(x2, w_ref[...], preferred_element_type=jnp.float32) + b_ref[...]
    )                                                   # (M, Dp) f32

    # Per-head similarity via ONE narrow (Dp x Hl) matmul: lane h carries
    # dot(attn_head_h, cv_h), so the softmax below runs on (TB, T, 128) and the
    # exp/max/sum work is head_size-fold smaller than a feature-width softmax.
    sim = jnp.dot(attn.astype(jnp.bfloat16), s_ref[...],
                  preferred_element_type=jnp.float32).reshape(tb, t, hl)

    # Padding mask (precomputed on the host from the f32 input; adding -1e10 is
    # bit-identical to replacement at f32 since ulp(1e10) >> |sim|).
    sim = sim + mask_ref[...]

    # Softmax over the sequence axis (per head, lane-dense).
    mx = jnp.max(sim, axis=1, keepdims=True)            # (TB, 1, Hl)
    ex = jnp.exp(sim - mx)
    denom = jnp.sum(ex, axis=1, keepdims=True)
    sm = ex * pl.reciprocal(denom, approx=True)         # (TB, T, Hl) f32

    # Broadcast per-head weights back to feature width with one 0/1 matmul
    # (K = 128, MXU has slack), then weighted sum over the sequence in f32.
    sm_full = jnp.dot(sm.reshape(m_rows, hl), e_ref[...],
                      preferred_element_type=jnp.float32).reshape(tb, t, dp)
    o_ref[...] = jnp.sum(x3.astype(jnp.float32) * sm_full, axis=1).astype(o_ref.dtype)


def make_context_attention(weight, bias, context_vector):
    """Build a jitted forward(x) for the PyTorch ContextAttention module
    (head_size != 1 branch).  weight: (D, D) torch Linear weight (out, in);
    bias: (D,); context_vector: (num_head, head_size, 1).  The padded /
    derived operands (W^T, S, E) are built once here and reused across calls."""
    size = int(weight.shape[0])
    num_head, head_size = int(context_vector.shape[0]), int(context_vector.shape[1])
    if num_head * head_size != size:
        raise ValueError("size must be dividable by num_head", size, num_head)
    if head_size == 1:
        # TODO(synk): head_size == 1 branch (softmax over the raw linear output,
        # no tanh / context vector / mask) is not implemented.
        raise NotImplementedError("head_size == 1 branch not implemented")

    d_pad = _round_up(max(size, 128), 128)
    h_lanes = _round_up(max(num_head, 128), 128)

    # attention_net weight (transposed for x @ W^T) and bias, lane-padded.
    w_t = (jnp.zeros((d_pad, d_pad), jnp.float32)
           .at[:size, :size].set(jnp.asarray(weight, jnp.float32).T)
           .astype(jnp.bfloat16))
    b_p = jnp.zeros((1, d_pad), jnp.float32).at[0, :size].set(
        jnp.asarray(bias, jnp.float32))

    # Narrow similarity matrix: S[d, h] = cv[h, d % head_size] iff head(d) == h.
    d_idx = jnp.arange(size)
    cv_flat = jnp.asarray(context_vector, jnp.float32)[:, :, 0].reshape(size)
    s_n = (jnp.zeros((d_pad, h_lanes), jnp.float32)
           .at[d_idx, d_idx // head_size].set(cv_flat)
           .astype(jnp.bfloat16))
    # 0/1 broadcast-back matrix: E[h, d] = 1 iff head(d) == h.
    e_mat = jnp.zeros((h_lanes, d_pad), jnp.float32).at[d_idx // head_size, d_idx].set(1.0)

    # Scoped-VMEM limit ~= 75% of physical: ~96 MiB on v5e/v6e, ~48 MiB on v7x.
    try:
        vmem_cap = int(pltpu.get_tpu_info().vmem_capacity_bytes)
    except Exception:
        vmem_cap = 64 * 1024 * 1024
    vmem_limit = min(vmem_cap * 3 // 4, 100 * 1024 * 1024)

    @jax.jit
    def forward(x):
        b, t, d = x.shape
        if d != size:
            raise ValueError("feature size mismatch", d, size)
        t_pad = _round_up(t, 8)            # keep (TB,T,Dp)<->(TB*T,Dp) reshapes free
        tb = _choose_batch_tile(b, t_pad, d_pad)
        b_pad = _round_up(b, tb)

        # Additive mask from the *f32* input (exact ==0 semantics even though x
        # is DMA'd as bf16); padded time/batch rows get -2e10 so they receive
        # exactly zero softmax weight even if every real position is masked.
        mask = jnp.where(jnp.sum(x, axis=-1, keepdims=True) == 0.0,
                         jnp.float32(-1e10), jnp.float32(0.0))       # (B, T, 1)
        if (b_pad, t_pad) != (b, t):
            mask = (jnp.full((b_pad, t_pad, 1), -2e10, jnp.float32)
                    .at[:b, :t, :].set(mask))

        # x DMA'd as bf16 (half the HBM bytes); skip the pad when already aligned.
        x_bf = x.astype(jnp.bfloat16)
        if (b_pad, t_pad, d_pad) != (b, t, d):
            x_bf = (jnp.zeros((b_pad, t_pad, d_pad), jnp.bfloat16)
                    .at[:b, :t, :d].set(x_bf))

        out = pl.pallas_call(
            _context_attention_kernel,
            out_shape=jax.ShapeDtypeStruct((b_pad, d_pad), jnp.float32),
            grid=(b_pad // tb,),
            in_specs=[
                pl.BlockSpec((tb, t_pad, d_pad), lambda i: (i, 0, 0)),  # x tile
                pl.BlockSpec((tb, t_pad, 1), lambda i: (i, 0, 0)),      # mask tile
                # Grid-invariant operands: whole-array, VMEM-resident
                # (fetched once, no double-buffer waste).
                pl.BlockSpec(memory_space=pltpu.MemorySpace.VMEM),      # W^T
                pl.BlockSpec(memory_space=pltpu.MemorySpace.VMEM),      # bias
                pl.BlockSpec(memory_space=pltpu.MemorySpace.VMEM),      # S (narrow)
                pl.BlockSpec(memory_space=pltpu.MemorySpace.VMEM),      # E (0/1)
            ],
            out_specs=pl.BlockSpec((tb, d_pad), lambda i: (i, 0)),
            compiler_params=pltpu.CompilerParams(
                dimension_semantics=("parallel",),
                vmem_limit_bytes=vmem_limit,
            ),
        )(x_bf, mask, w_t, b_p, s_n, e_mat)
        return out[:b, :d]

    return forward


def reference_forward(x, weight, bias, cv):
    """Pure-JAX replica of the PyTorch forward (head_size != 1 branch)."""
    B, T, D = x.shape
    H, hs, _ = cv.shape
    attn = jnp.tanh(x @ weight.T + bias)                              # (B, T, D)
    attn_split = attn.reshape(B, T, H, hs)
    sim = jnp.einsum("bthk,hk->bth", attn_split, cv[:, :, 0])         # (B, T, H)
    mask = (x.sum(-1) == 0)[..., None]                                # (B, T, 1)
    sim = jnp.where(mask, -1e10, sim)
    sm = jax.nn.softmax(sim, axis=1)                                  # (B, T, H)
    x_split = x.reshape(B, T, H, hs)
    weighted = x_split * sm[..., None]
    return weighted.reshape(B, T, D).sum(axis=1)                      # (B, D)


if __name__ == "__main__":
    B, T, D, H = 2, 8, 32, 4
    hs = D // H

    key = jax.random.PRNGKey(0)
    kx, kw, kb, kc = jax.random.split(key, 4)

    x = jax.random.normal(kx, (B, T, D), dtype=jnp.float32)
    # make one sequence position a "padding" row to exercise the mask path
    x = x.at[0, 3, :].set(0.0)

    # nn.Linear(size, size): weight (D, D), bias (D,)
    weight = jax.random.uniform(kw, (D, D), minval=-0.1, maxval=0.1, dtype=jnp.float32)
    bias = jax.random.uniform(kb, (D,), minval=-0.1, maxval=0.1, dtype=jnp.float32)

    # context_vector: (num_head, head_size, 1), uniform(-1, 1)
    cv = jax.random.uniform(kc, (H, hs, 1), minval=-1.0, maxval=1.0, dtype=jnp.float32)

    fwd = make_context_attention(weight, bias, cv)
    out = jax.block_until_ready(fwd(x))

    ref = reference_forward(x, weight, bias, cv)
    assert out.shape == (B, D)
    # bf16 MXU inputs -> compare at a bf16-appropriate tolerance
    assert jnp.allclose(out, ref, atol=2e-2, rtol=2e-2), "mismatch vs reference"

    print("KERNEL_OK")
</pallas_src>

<mosaic_0001>
module attributes {stable_mosaic.version = 11 : i64} {
  func.func @_context_attention_kernel(%arg0: i32, %arg1: memref<8x8x128xbf16, #tpu.memory_space<vmem>>, %arg2: memref<8x8x1xf32, #tpu.memory_space<vmem>>, %arg3: memref<128x128xbf16, #tpu.memory_space<vmem>>, %arg4: memref<1x128xf32, #tpu.memory_space<vmem>>, %arg5: memref<128x128xbf16, #tpu.memory_space<vmem>>, %arg6: memref<128x128xf32, #tpu.memory_space<vmem>>, %arg7: memref<8x128xf32, #tpu.memory_space<vmem>>) attributes {dimension_semantics = [#tpu.dimension_semantics<parallel>], iteration_bounds = array<i64: 1>, scalar_prefetch = 0 : i64, scratch_operands = 0 : i64, tpu.core_type = #tpu.core_type<tc>, window_params = [{transform_indices = @transform_0, window_bounds = array<i64: 8, 8, 128>}, {transform_indices = @transform_1, window_bounds = array<i64: 8, 8, 1>}, {pipeline_mode = #tpu.pipeline_mode<synchronous>, transform_indices = @transform_2, window_bounds = array<i64: 128, 128>}, {pipeline_mode = #tpu.pipeline_mode<synchronous>, transform_indices = @transform_3, window_bounds = array<i64: 1, 128>}, {pipeline_mode = #tpu.pipeline_mode<synchronous>, transform_indices = @transform_4, window_bounds = array<i64: 128, 128>}, {pipeline_mode = #tpu.pipeline_mode<synchronous>, transform_indices = @transform_5, window_bounds = array<i64: 128, 128>}, {transform_indices = @transform_6, window_bounds = array<i64: 8, 128>}]} {
    %c0 = arith.constant 0 : index
    %c0_0 = arith.constant 0 : index
    %c0_1 = arith.constant 0 : index
    %0 = vector.load %arg1[%c0, %c0_0, %c0_1] : memref<8x8x128xbf16, #tpu.memory_space<vmem>>, vector<8x8x128xbf16>
    %1 = vector.shape_cast %0 : vector<8x8x128xbf16> to vector<64x128xbf16>
    %c0_2 = arith.constant 0 : index
    %c0_3 = arith.constant 0 : index
    %2 = vector.load %arg3[%c0_2, %c0_3] : memref<128x128xbf16, #tpu.memory_space<vmem>>, vector<128x128xbf16>
    %cst = arith.constant dense<0.000000e+00> : vector<64x128xf32>
    %3 = tpu.matmul %1, %2, %cst {dimension_numbers = #tpu.dot_dimension_numbers<[1], [0], [0], [1], [0, 0, 1, 1], [], []>} : vector<64x128xbf16>, vector<128x128xbf16>, vector<64x128xf32> -> vector<64x128xf32>
    %c0_4 = arith.constant 0 : index
    %c0_5 = arith.constant 0 : index
    %4 = vector.load %arg4[%c0_4, %c0_5] : memref<1x128xf32, #tpu.memory_space<vmem>>, vector<1x128xf32>
    %5 = vector.broadcast %4 : vector<1x128xf32> to vector<64x128xf32>
    %6 = arith.addf %3, %5 : vector<64x128xf32>
    %7 = math.tanh %6 : vector<64x128xf32>
    %8 = arith.truncf %7 : vector<64x128xf32> to vector<64x128xbf16>
    %c0_6 = arith.constant 0 : index
    %c0_7 = arith.constant 0 : index
    %9 = vector.load %arg5[%c0_6, %c0_7] : memref<128x128xbf16, #tpu.memory_space<vmem>>, vector<128x128xbf16>
    %cst_8 = arith.constant dense<0.000000e+00> : vector<64x128xf32>
    %10 = tpu.matmul %8, %9, %cst_8 {dimension_numbers = #tpu.dot_dimension_numbers<[1], [0], [0], [1], [0, 0, 1, 1], [], []>} : vector<64x128xbf16>, vector<128x128xbf16>, vector<64x128xf32> -> vector<64x128xf32>
    %11 = vector.shape_cast %10 : vector<64x128xf32> to vector<8x8x128xf32>
    %c0_9 = arith.constant 0 : index
    %c0_10 = arith.constant 0 : index
    %c0_11 = arith.constant 0 : index
    %12 = vector.load %arg2[%c0_9, %c0_10, %c0_11] : memref<8x8x1xf32, #tpu.memory_space<vmem>>, vector<8x8x1xf32>
    %13 = vector.broadcast %12 : vector<8x8x1xf32> to vector<8x8x128xf32>
    %14 = arith.addf %11, %13 : vector<8x8x128xf32>
    %cst_12 = arith.constant dense<0xFF800000> : vector<8x128xf32>
    %15 = vector.multi_reduction <maximumf>, %14, %cst_12 [1] : vector<8x8x128xf32> to vector<8x128xf32>
    %16 = vector.shape_cast %15 : vector<8x128xf32> to vector<8x1x128xf32>
    %17 = vector.broadcast %16 : vector<8x1x128xf32> to vector<8x8x128xf32>
    %18 = arith.subf %14, %17 : vector<8x8x128xf32>
    %19 = math.exp %18 : vector<8x8x128xf32>
    %cst_13 = arith.constant dense<0.000000e+00> : vector<8x128xf32>
    %20 = vector.multi_reduction <add>, %19, %cst_13 [1] : vector<8x8x128xf32> to vector<8x128xf32>
    %21 = vector.shape_cast %20 : vector<8x128xf32> to vector<8x1x128xf32>
    %22 = tpu.reciprocal %21 {approx = true} : vector<8x1x128xf32> -> vector<8x1x128xf32>
    %23 = vector.broadcast %22 : vector<8x1x128xf32> to vector<8x8x128xf32>
    %24 = arith.mulf %19, %23 : vector<8x8x128xf32>
    %25 = vector.shape_cast %24 : vector<8x8x128xf32> to vector<64x128xf32>
    %c0_14 = arith.constant 0 : index
    %c0_15 = arith.constant 0 : index
    %26 = vector.load %arg6[%c0_14, %c0_15] : memref<128x128xf32, #tpu.memory_space<vmem>>, vector<128x128xf32>
    %cst_16 = arith.constant dense<0.000000e+00> : vector<64x128xf32>
    %27 = tpu.matmul %25, %26, %cst_16 {dimension_numbers = #tpu.dot_dimension_numbers<[1], [0], [0], [1], [0, 0, 1, 1], [], []>} : vector<64x128xf32>, vector<128x128xf32>, vector<64x128xf32> -> vector<64x128xf32>
    %28 = vector.shape_cast %27 : vector<64x128xf32> to vector<8x8x128xf32>
    %29 = arith.extf %0 : vector<8x8x128xbf16> to vector<8x8x128xf32>
    %30 = arith.mulf %29, %28 : vector<8x8x128xf32>
    %cst_17 = arith.constant dense<0.000000e+00> : vector<8x128xf32>
    %31 = vector.multi_reduction <add>, %30, %cst_17 [1] : vector<8x8x128xf32> to vector<8x128xf32>
    %c0_18 = arith.constant 0 : index
    %c0_19 = arith.constant 0 : index
    %32 = vector.load %arg7[%c0_18, %c0_19] : memref<8x128xf32, #tpu.memory_space<vmem>>, vector<8x128xf32>
    tpu.vector_store %arg7[%c0_18, %c0_19], %31 {strides = array<i32>} : memref<8x128xf32, #tpu.memory_space<vmem>>, vector<8x128xf32>,
    return
  }
  func.func @transform_0(%arg0: i32) -> (i32, i32, i32) {
    %c0_i32 = arith.constant 0 : i32
    %c0_i32_0 = arith.constant 0 : i32
    %c0_i32_1 = arith.constant 0 : i32
    return %arg0, %c0_i32, %c0_i32_0 : i32, i32, i32
  }
  func.func @transform_1(%arg0: i32) -> (i32, i32, i32) {
    %c0_i32 = arith.constant 0 : i32
    %c0_i32_0 = arith.constant 0 : i32
    %c0_i32_1 = arith.constant 0 : i32
    return %arg0, %c0_i32, %c0_i32_0 : i32, i32, i32
  }
  func.func @transform_2(%arg0: i32) -> (i32, i32) {
    %c0_i32 = arith.constant 0 : i32
    %c0_i32_0 = arith.constant 0 : i32
    %c0_i32_1 = arith.constant 0 : i32
    return %c0_i32, %c0_i32_0 : i32, i32
  }
  func.func @transform_3(%arg0: i32) -> (i32, i32) {
    %c0_i32 = arith.constant 0 : i32
    %c0_i32_0 = arith.constant 0 : i32
    %c0_i32_1 = arith.constant 0 : i32
    return %c0_i32, %c0_i32_0 : i32, i32
  }
  func.func @transform_4(%arg0: i32) -> (i32, i32) {
    %c0_i32 = arith.constant 0 : i32
    %c0_i32_0 = arith.constant 0 : i32
    %c0_i32_1 = arith.constant 0 : i32
    return %c0_i32, %c0_i32_0 : i32, i32
  }
  func.func @transform_5(%arg0: i32) -> (i32, i32) {
    %c0_i32 = arith.constant 0 : i32
    %c0_i32_0 = arith.constant 0 : i32
    %c0_i32_1 = arith.constant 0 : i32
    return %c0_i32, %c0_i32_0 : i32, i32
  }
  func.func @transform_6(%arg0: i32) -> (i32, i32) {
    %c0_i32 = arith.constant 0 : i32
    %c0_i32_0 = arith.constant 0 : i32
    return %arg0, %c0_i32 : i32, i32
  }
}

</mosaic_0001>

<bundles_post_ra>
// kernel: forward.1
= control target key start
LH: loop header
LB: loop body
LE: loop exit
PB: predicated region body
PF: predicated region fallthrough
CT: control target
= control target key end

     0   :  { %11 = vsyncpa [#allocation3], 0  ;;  %s1260_s0 = inlined_call_operand.vmem [shape: bf16[8,8,128], index: 0, kind: input, shape index: {}]   ;;  %s1261_s1 = inlined_call_operand.vmem [shape: f32[8,8,1], index: 1, kind: input, shape index: {}]   ;;  %s1262_s2 = inlined_call_operand.hbm [shape: bf16[128,128], index: 2, kind: input, shape index: {}]   ;;  %s1263_s3 = inlined_call_operand.vmem [shape: f32[1,128], index: 3, kind: input, shape index: {}]   ;;  %s1264_s4 = inlined_call_operand.hbm [shape: bf16[128,128], index: 4, kind: input, shape index: {}]   ;;  %s1265_s5 = inlined_call_operand.vmem [shape: f32[128,128], index: 5, kind: input, shape index: {}]   ;;  %s1266_s6 = inlined_call_operand.vmem [shape: f32[8,128], index: 6, kind: output, shape index: {}]  }
   0x1   :  { %12 = vsyncpa [#allocation5], 0  ;;  %s1084_s21 = smov [#allocation2]  }
   0x2   :  { %s22_s22 = sshll.u32 %s1084_s21, 4  ;;  %s23_s22 = int_to_ptr.vmem [resolvable:$true] %s22_s22 }
   0x3   :  { %s1048_s23 = scalar_lea.vmem %s23_s22, 1024  ;;  %p1053_p1 = scmp.lt.s32.totalorder %s23_s22, %s23_s22 }
   0x4   :  { %p1049_p0 = scmp.ne.s32.totalorder %s23_s22, %s1048_s23  ;;  %p1054_p2 = scmp.lt.s32.totalorder %s1048_s23, %s1048_s23 }
   0x6   :  { %p1055_p3 = por %p1054_p2, %p1053_p1 }
   0x8   :  { %p1056_p4 = pnand %p1055_p3, %p1049_p0 }
   0xa   :  { %1059 = shalt.err (!%p1056_p4)
}
   0xb   :  { %s1085_s24 = smov 64   ;;  %s1086_s25 = smov 4  }
   0xc   :  { %28 = dma.hbm_to_vmem [thread:$0]  %s1262_s2, 1024, %s23_s22, [#allocation3], %s1085_s24, %s1085_s24, %s1086_s25  }
   0xd   :  { %s1087_s28 = smov [#allocation4]  }
   0xe   :  { %s36_s29 = sshll.u32 %s1087_s28, 4  ;;  %s37_s29 = int_to_ptr.vmem [resolvable:$true] %s36_s29 }
   0xf   :  { %s1068_s30 = scalar_lea.vmem %s37_s29, 1024  ;;  %p1073_p6 = scmp.lt.s32.totalorder %s37_s29, %s37_s29 }
  0x10   :  { %p1069_p5 = scmp.ne.s32.totalorder %s37_s29, %s1068_s30  ;;  %p1074_p7 = scmp.lt.s32.totalorder %s1068_s30, %s1068_s30 }
  0x12   :  { %p1075_p8 = por %p1074_p7, %p1073_p6 }
  0x14   :  { %p1076_p9 = pnand %p1075_p8, %p1069_p5 }
  0x16   :  { %1079 = shalt.err (!%p1076_p9)
}
  0x17   :  { %42 = dma.hbm_to_vmem [thread:$0]  %s1264_s4, 1024, %s37_s29, [#allocation5], %s1085_s24, %s1085_s24, %s1086_s25  }
  0x18   :  { %1080 = dma.done.wait [#allocation3], 1024  }
  0x19   :  { %1081 = vsyncadd [#allocation3], 4294966272 }
  0x1a   :  { %1082 = dma.done.wait [#allocation5], 1024  }
  0x1b   :  { %1083 = vsyncadd [#allocation5], 4294966272  ;;  %v968_v0 = vld [vmem:[#allocation2 + $0x38] sm:$0xff]   ;;  %v969_v1 = vld [vmem:[#allocation2 + $0x30] sm:$0xff]   ;;  %v1088_v22 = vmov 0   ;;  %vm746_vm0 = vcmask 1041409  }
  0x1c   :  { %837 = vmatprep.subr.bf16.mxu0 %v968_v0  ;;  %v970_v2 = vld [vmem:[#allocation2 + $0x28] sm:$0xff]   ;;  %v971_v3 = vld [vmem:[#allocation2 + $0x20] sm:$0xff]   ;;  %v972_v5 = vld [vmem:[#allocation2 + $0x18] sm:$0xff]   ;;  %966 = vset.pattern.permute.xlu0 %v1088_v22  ;;  %vm748_vm1 = vcmask 1042434   ;;  %vm750_vm2 = vcmask 1043459   ;;  %vm752_vm3 = vcmask 1044484  }
  0x1d   :  { %838 = vmatpush3.bf16.msra.mxu0 %v968_v0  ;;  %v1133_v4 = vld [vmem:[%s1260_s0] sm:$0xff]   ;;  %v980_v6 = vld [vmem:[#allocation4 + $0x38] sm:$0xff]   ;;  %v981_v7 = vld [vmem:[#allocation4 + $0x30] sm:$0xff]   ;;  %967 = vset.pattern.permute.xlu1 %v1088_v22  ;;  %vm754_vm4 = vcmask 1045509   ;;  %vm756_vm5 = vcmask 1046534   ;;  %vm758_vm6 = vcmask 1047559  }
  0x1e   :  { %839 = vmatprep.subr.bf16.mxu0 %v969_v1  ;;  %853 = vmatprep.mubr.bf16.mxu0 %v1133_v4  ;;  %v973_v8 = vld [vmem:[#allocation2 + $0x10] sm:$0xff]   ;;  %v974_v9 = vld [vmem:[#allocation2 + $0x8] sm:$0xff]   ;;  %v975_v10 = vld [vmem:[#allocation2] sm:$0xff]  }
  0x1f   :  { %861 = vmatprep.subr.bf16.mxu1 %v980_v6  ;;  %v1139_v11 = vld [vmem:[%s1260_s0 + $0x8] sm:$0xff]   ;;  %v1144_v12 = vld [vmem:[%s1260_s0 + $0x10] sm:$0xff]   ;;  %v1151_v13 = vld [vmem:[%s1260_s0 + $0x18] sm:$0xff]  }
  0x20   :  { %862 = vmatpush3.bf16.msra.mxu1 %v980_v6  ;;  %v982_v14 = vld [vmem:[#allocation4 + $0x28] sm:$0xff]   ;;  %v983_v15 = vld [vmem:[#allocation4 + $0x20] sm:$0xff]   ;;  %v984_v16 = vld [vmem:[#allocation4 + $0x18] sm:$0xff]  }
  0x21   :  { %840 = vmatpush3.bf16.msra.mxu0 %v969_v1  ;;  %863 = vmatprep.subr.bf16.mxu1 %v981_v7  ;;  %v985_v17 = vld [vmem:[#allocation4 + $0x10] sm:$0xff]   ;;  %v986_v18 = vld [vmem:[#allocation4 + $0x8] sm:$0xff]   ;;  %v987_v19 = vld [vmem:[#allocation4] sm:$0xff]  }
  0x22   :  { %841 = vmatprep.subr.bf16.mxu0 %v970_v2  ;;  %v361_v20 = vld [vmem:[%s1261_s1] sm:$0xff]  ;;  %v363_v21 = vld [vmem:[%s1261_s1 + $0x10] sm:$0xff]  ;;  %v362_v23 = vld [vmem:[%s1261_s1 + $0x8] sm:$0xff] }
  0x23   :  { %371 = vperm.xlu0 %966, %v361_v20   ;;  %381 = vperm.xlu1 %967, %v363_v21   ;;  %v365_v24 = vld [vmem:[%s1261_s1 + $0x20] sm:$0xff]  ;;  %v364_v25 = vld [vmem:[%s1261_s1 + $0x18] sm:$0xff]  ;;  %v366_v26 = vld [vmem:[%s1261_s1 + $0x28] sm:$0xff] }
  0x24   :  { %864 = vmatpush3.bf16.msra.mxu1 %v981_v7  ;;  %v367_v27 = vld [vmem:[%s1261_s1 + $0x30] sm:$0xff]  ;;  %v368_v28 = vld [vmem:[%s1261_s1 + $0x38] sm:$0xff]  ;;  %v768_v30 = vld [vmem:[%s1263_s3] ss:$0 sm:$0xff] }
  0x25   :  { %842 = vmatpush3.bf16.msra.mxu0 %v970_v2  ;;  %865 = vmatprep.subr.bf16.mxu1 %v982_v14  ;;  %v568_v58 = vld [vmem:[%s1265_s5 + $0x78] sm:$0xff]  ;;  %v567_v59 = vld [vmem:[%s1265_s5 + $0x70] sm:$0xff]  ;;  %v566_v60 = vld [vmem:[%s1265_s5 + $0x68] sm:$0xff] }
  0x26   :  { %843 = vmatprep.subr.bf16.mxu0 %v971_v3  ;;  %v565_v61 = vld [vmem:[%s1265_s5 + $0x60] sm:$0xff]  ;;  %v564_v62 = vld [vmem:[%s1265_s5 + $0x58] sm:$0xff]  ;;  %v563_v63 = vld [vmem:[%s1265_s5 + $0x50] sm:$0xff] }
  0x27   :  { %376 = vperm.xlu0 %966, %v362_v23   ;;  %391 = vperm.xlu1 %967, %v365_v24   ;;  %v562_v0 = vld [vmem:[%s1265_s5 + $0x48] sm:$0xff]  ;;  %v561_v1 = vld [vmem:[%s1265_s5 + $0x40] sm:$0xff]  ;;  %v560_v2 = vld [vmem:[%s1265_s5 + $0x38] sm:$0xff] }
  0x28   :  { %866 = vmatpush3.bf16.msra.mxu1 %v982_v14  ;;  %v557_v6 = vld [vmem:[%s1265_s5 + $0x20] sm:$0xff]  ;;  %v556_v7 = vld [vmem:[%s1265_s5 + $0x18] sm:$0xff] }
  0x29   :  { %844 = vmatpush3.bf16.msra.mxu0 %v971_v3  ;;  %867 = vmatprep.subr.bf16.mxu1 %v983_v15  ;;  %v559_v3 = vld [vmem:[%s1265_s5 + $0x30] sm:$0xff] }
  0x2a   :  { %845 = vmatprep.subr.bf16.mxu0 %v972_v5 }
  0x2b   :  { %386 = vperm.xlu0 %966, %v364_v25   ;;  %396 = vperm.xlu1 %967, %v366_v26  }
  0x2c   :  { %868 = vmatpush3.bf16.msra.mxu1 %v983_v15 }
  0x2d   :  { %846 = vmatpush3.bf16.msra.mxu0 %v972_v5  ;;  %869 = vmatprep.subr.bf16.mxu1 %v984_v16  ;;  %v558_v5 = vld [vmem:[%s1265_s5 + $0x28] sm:$0xff] }
  0x2e   :  { %847 = vmatprep.subr.bf16.mxu0 %v973_v8 }
  0x2f   :  { %401 = vperm.xlu0 %966, %v367_v27   ;;  %406 = vperm.xlu1 %967, %v368_v28  }
  0x30   :  { %870 = vmatpush3.bf16.msra.mxu1 %v984_v16 }
  0x31   :  { %848 = vmatpush3.bf16.msra.mxu0 %v973_v8  ;;  %871 = vmatprep.subr.bf16.mxu1 %v985_v17  ;;  %v555_v8 = vld [vmem:[%s1265_s5 + $0x10] sm:$0xff] }
  0x32   :  { %849 = vmatprep.subr.bf16.mxu0 %v974_v9 }
  0x34   :  { %872 = vmatpush3.bf16.msra.mxu1 %v985_v17 }
  0x35   :  { %850 = vmatpush3.bf16.msra.mxu0 %v974_v9  ;;  %873 = vmatprep.subr.bf16.mxu1 %v986_v18  ;;  %v554_v9 = vld [vmem:[%s1265_s5 + $0x8] sm:$0xff] }
  0x36   :  { %851 = vmatprep.subr.bf16.mxu0 %v975_v10 }
  0x38   :  { %874 = vmatpush3.bf16.msra.mxu1 %v986_v18 }
  0x39   :  { %852 = vmatpush3.bf16.msra.mxu0 %v975_v10  ;;  %875 = vmatprep.subr.bf16.mxu1 %v987_v19  ;;  %v553_v10 = vld [vmem:[%s1265_s5] sm:$0xff] }
  0x3a   :  { %885 = vmatprep.subr.mxu0 %v568_v58 }
  0x3c   :  { %854 = vmatmul.mubr.bf16.vlgmr.msra.gmra.mxu0 %v1139_v11  ;;  %876 = vmatpush3.bf16.msra.mxu1 %v987_v19 }
  0x3d   :  { %857 = vmatprep.mubr.bf16.mxu0 %v1144_v12  ;;  %929 = vmatprep.subr.mxu1 %v568_v58 }
  0x3e   :  { %886 = vmatpush3.msra.mxu0 %v568_v58 }
  0x3f   :  { %887 = vmatprep.subr.mxu0 %v567_v59 }
  0x40   :  { %888 = vmatpush3.msra.mxu0 %v567_v59 }
  0x41   :  { %889 = vmatprep.subr.mxu0 %v566_v60 }
  0x42   :  { %890 = vmatpush3.msra.mxu0 %v566_v60 }
  0x43   :  { %891 = vmatprep.subr.mxu0 %v565_v61 }
  0x44   :  { %858 = vmatmul.mubr.bf16.gmra.mxu0 %v1151_v13 }
  0x45   :  { %892 = vmatpush3.msra.mxu0 %v565_v61 }
  0x46   :  { %893 = vmatprep.subr.mxu0 %v564_v62 }
  0x47   :  { %894 = vmatpush3.msra.mxu0 %v564_v62 }
  0x48   :  { %895 = vmatprep.subr.mxu0 %v563_v63 }
  0x49   :  { %896 = vmatpush3.msra.mxu0 %v563_v63 }
  0x4a   :  { %897 = vmatprep.subr.mxu0 %v562_v0 }
  0x4b   :  { %898 = vmatpush3.msra.mxu0 %v562_v0 }
  0x4c   :  { %899 = vmatprep.subr.mxu0 %v561_v1 }
  0x4d   :  { %900 = vmatpush3.msra.mxu0 %v561_v1 }
  0x4e   :  { %901 = vmatprep.subr.mxu0 %v560_v2 }
  0x4f   :  { %902 = vmatpush3.msra.mxu0 %v560_v2 }
  0x50   :  { %903 = vmatprep.subr.mxu0 %v559_v3 }
  0x51   :  { %904 = vmatpush3.msra.mxu0 %v559_v3 }
  0x52   :  { %905 = vmatprep.subr.mxu0 %v558_v5 }
  0x53   :  { %906 = vmatpush3.msra.mxu0 %v558_v5 }
  0x54   :  { %907 = vmatprep.subr.mxu0 %v557_v6 }
  0x55   :  { %908 = vmatpush3.msra.mxu0 %v557_v6 }
  0x56   :  { %909 = vmatprep.subr.mxu0 %v556_v7 }
  0x57   :  { %910 = vmatpush3.msra.mxu0 %v556_v7 }
  0x58   :  { %911 = vmatprep.subr.mxu0 %v555_v8 }
  0x59   :  { %912 = vmatpush3.msra.mxu0 %v555_v8 }
  0x5a   :  { %913 = vmatprep.subr.mxu0 %v554_v9 }
  0x5b   :  { %914 = vmatpush3.msra.mxu0 %v554_v9 }
  0x5c   :  { %915 = vmatprep.subr.mxu0 %v553_v10 }
  0x5d   :  { %916 = vmatpush3.msra.mxu0 %v553_v10 }
  0x9e   :  { %v372_v14 = vpop.permute.xlu0 %371  ;;  %v382_v15 = vpop.permute.xlu1 %381 }
  0xa2   :  { %v377_v16 = vpop.permute.xlu0 %376  ;;  %v392_v18 = vpop.permute.xlu1 %391 }
  0xa6   :  { %v387_v22 = vpop.permute.xlu0 %386 }
  0xfc   :  { %v855_v29 = vpop.f32.mrf.mxu0 }
  0xfd   :  { %v198_v35 = vadd.f32 %v855_v29, %v768_v30 }
  0xfe   :  { %v189_v31 = vpop.f32.mrf.mxu0 }
  0xff   :  { %v190_v32 = vadd.f32 %v768_v30, %v189_v31 }
 0x100   :  { %v856_v33 = vpop.f32.mrf.mxu0 }
 0x101   :  { %v201_v34 = vadd.f32 %v856_v33, %v768_v30  ;;  %992 = vtanh.f32 %v190_v32 }
 0x102   :  { %v192_v36 = vpop.f32.mrf.mxu0 }
 0x103   :  { %v193_v37 = vadd.f32 %v768_v30, %v192_v36  ;;  %994 = vtanh.f32 %v201_v34 }
 0x104   :  { %v859_v38 = vpop.f32.mrf.mxu0 }
 0x105   :  { %996 = vtanh.f32 %v193_v37  ;;  %v214_v43 = vadd.f32 %v859_v38, %v768_v30  ;;  %v402_v38 = vpop.permute.xlu0 %401 }
 0x106   :  { %998 = vtanh.f32 %v198_v35  ;;  %v205_v39 = vpop.f32.mrf.mxu0 }
 0x107   :  { %v206_v40 = vadd.f32 %v768_v30, %v205_v39 }
 0x108   :  { %v860_v41 = vpop.f32.mrf.mxu0 }
 0x109   :  { %v217_v42 = vadd.f32 %v860_v41, %v768_v30  ;;  %1000 = vtanh.f32 %v206_v40 }
 0x10a   :  { %v208_v44 = vpop.f32.mrf.mxu0 }
 0x10b   :  { %v209_v45 = vadd.f32 %v768_v30, %v208_v44  ;;  %1002 = vtanh.f32 %v217_v42  ;;  %v397_v30 = vpop.permute.xlu1 %396 }
 0x10d   :  { %1004 = vtanh.f32 %v209_v45 }
 0x10e   :  { %1006 = vtanh.f32 %v214_v43  ;;  %v993_v46 = vpop.eup %992 }
 0x110   :  { %v995_v47 = vpop.eup %994 }
 0x112   :  { %v997_v48 = vpop.eup %996 }
 0x113   :  { %v999_v49 = vpop.eup %998  ;;  %v228_v50 = vpack.c.bf16 %v997_v48, %v993_v46 }
 0x114   :  { %v229_v51 = vpack.c.bf16 %v995_v47, %v999_v49 }
 0x115   :  { %877 = vmatprep.mubr.bf16.mxu1 %v228_v50 }
 0x116   :  { %878 = vmatmul.mubr.bf16.vlgmr.msra.gmra.mxu1 %v229_v51  ;;  %v1001_v52 = vpop.eup %1000 }
 0x117   :  { %945 = vmatpush3.msra.mxu1 %v568_v58 }
 0x118   :  { %v1003_v53 = vpop.eup %1002  ;;  %930 = vmatprep.subr.mxu1 %v567_v59 }
 0x119   :  { %946 = vmatpush3.msra.mxu1 %v567_v59 }
 0x11a   :  { %v1005_v54 = vpop.eup %1004  ;;  %931 = vmatprep.subr.mxu1 %v566_v60 }
 0x11b   :  { %v1007_v55 = vpop.eup %1006  ;;  %v230_v56 = vpack.c.bf16 %v1005_v54, %v1001_v52  ;;  %947 = vmatpush3.msra.mxu1 %v566_v60  ;;  %v407_v52 = vpop.permute.xlu1 %406 }
 0x11c   :  { %v231_v57 = vpack.c.bf16 %v1003_v53, %v1007_v55  ;;  %932 = vmatprep.subr.mxu1 %v565_v61 }
 0x11d   :  { %881 = vmatprep.mubr.bf16.mxu1 %v230_v56  ;;  %948 = vmatpush3.msra.mxu1 %v565_v61 }
 0x11e   :  { %882 = vmatmul.mubr.bf16.gmra.mxu1 %v231_v57  ;;  %933 = vmatprep.subr.mxu1 %v564_v62 }
 0x11f   :  { %949 = vmatpush3.msra.mxu1 %v564_v62 }
 0x120   :  { %934 = vmatprep.subr.mxu1 %v563_v63 }
 0x121   :  { %950 = vmatpush3.msra.mxu1 %v563_v63 }
 0x122   :  { %935 = vmatprep.subr.mxu1 %v562_v0 }
 0x123   :  { %951 = vmatpush3.msra.mxu1 %v562_v0 }
 0x124   :  { %936 = vmatprep.subr.mxu1 %v561_v1 }
 0x125   :  { %952 = vmatpush3.msra.mxu1 %v561_v1 }
 0x126   :  { %937 = vmatprep.subr.mxu1 %v560_v2 }
 0x127   :  { %953 = vmatpush3.msra.mxu1 %v560_v2 }
 0x128   :  { %938 = vmatprep.subr.mxu1 %v559_v3 }
 0x129   :  { %954 = vmatpush3.msra.mxu1 %v559_v3 }
 0x12a   :  { %939 = vmatprep.subr.mxu1 %v558_v5 }
 0x12b   :  { %955 = vmatpush3.msra.mxu1 %v558_v5 }
 0x12c   :  { %940 = vmatprep.subr.mxu1 %v557_v6 }
 0x12d   :  { %956 = vmatpush3.msra.mxu1 %v557_v6 }
 0x12e   :  { %941 = vmatprep.subr.mxu1 %v556_v7 }
 0x12f   :  { %957 = vmatpush3.msra.mxu1 %v556_v7 }
 0x130   :  { %942 = vmatprep.subr.mxu1 %v555_v8 }
 0x131   :  { %958 = vmatpush3.msra.mxu1 %v555_v8 }
 0x132   :  { %943 = vmatprep.subr.mxu1 %v554_v9 }
 0x133   :  { %959 = vmatpush3.msra.mxu1 %v554_v9 }
 0x134   :  { %944 = vmatprep.subr.mxu1 %v553_v10 }
 0x135   :  { %960 = vmatpush3.msra.mxu1 %v553_v10 }
 0x1d6   :  { %v879_v17 = vpop.f32.mrf.mxu1 }
 0x1d7   :  { %v411_v19 = vadd.f32 %v879_v17, %v382_v15 }
 0x1d8   :  { %v330_v20 = vpop.f32.mrf.mxu1 }
 0x1d9   :  { %v429_v21 = vrot.slane %v411_v19, 4  ;;  %v409_v23 = vadd.f32 %v372_v14, %v330_v20 }
 0x1da   :  { %v880_v24 = vpop.f32.mrf.mxu1 }
 0x1db   :  { %v430_v25 = vmax.f32 %v411_v19, %v429_v21  ;;  %v417_v26 = vrot.slane %v409_v23, 4  ;;  %v412_v27 = vadd.f32 %v880_v24, %v387_v22 }
 0x1dc   :  { %v333_v28 = vpop.f32.mrf.mxu1 }
 0x1dd   :  { %v431_v29 = vrot.slane %v430_v25, 2  ;;  %v418_v31 = vmax.f32 %v409_v23, %v417_v26  ;;  %v435_v32 = vrot.slane %v412_v27, 4  ;;  %v410_v33 = vadd.f32 %v377_v16, %v333_v28 }
 0x1de   :  { %v883_v34 = vpop.f32.mrf.mxu1 }
 0x1df   :  { %v432_v35 = vmax.f32 %v430_v25, %v431_v29  ;;  %v419_v36 = vrot.slane %v418_v31, 2  ;;  %v436_v37 = vmax.f32 %v412_v27, %v435_v32  ;;  %v423_v39 = vrot.slane %v410_v33, 4 }
 0x1e0   :  { %v415_v40 = vadd.f32 %v883_v34, %v402_v38  ;;  %v346_v41 = vpop.f32.mrf.mxu1 }
 0x1e1   :  { %v433_v42 = vrot.slane %v432_v35, 1  ;;  %v420_v43 = vmax.f32 %v418_v31, %v419_v36  ;;  %v437_v44 = vrot.slane %v436_v37, 2  ;;  %v424_v45 = vmax.f32 %v410_v33, %v423_v39 }
 0x1e2   :  { %v453_v46 = vrot.slane %v415_v40, 4  ;;  %v413_v47 = vadd.f32 %v392_v18, %v346_v41  ;;  %v884_v48 = vpop.f32.mrf.mxu1 }
 0x1e3   :  { %v434_v49 = vmax.f32 %v432_v35, %v433_v42  ;;  %v421_v50 = vrot.slane %v420_v43, 1  ;;  %v438_v51 = vmax.f32 %v436_v37, %v437_v44  ;;  %v425_v53 = vrot.slane %v424_v45, 2 }
 0x1e4   :  { %v454_v54 = vmax.f32 %v415_v40, %v453_v46  ;;  %v441_v55 = vrot.slane %v413_v47, 4  ;;  %v416_v56 = vadd.f32 %v884_v48, %v407_v52  ;;  %v349_v57 = vpop.f32.mrf.mxu1 }
 0x1e5   :  { %v467_v58 = vsub.f32 %v411_v19, %v434_v49  ;;  %v422_v59 = vmax.f32 %v420_v43, %v421_v50  ;;  %v439_v60 = vrot.slane %v438_v51, 1  ;;  %v426_v61 = vmax.f32 %v424_v45, %v425_v53 }
 0x1e6   :  { %v455_v62 = vrot.slane %v454_v54, 2  ;;  %v442_v63 = vmax.f32 %v413_v47, %v441_v55  ;;  %v459_v0 = vrot.slane %v416_v56, 4  ;;  %v414_v1 = vadd.f32 %v397_v30, %v349_v57 }
 0x1e7   :  { %v477_v2 = vmul.f32 1.442695, %v467_v58  ;;  %v465_v3 = vsub.f32 %v409_v23, %v422_v59  ;;  %v440_v5 = vmax.f32 %v438_v51, %v439_v60  ;;  %v427_v6 = vrot.slane %v426_v61, 1 }
 0x1e8   :  { %v456_v7 = vmax.f32 %v454_v54, %v455_v62  ;;  %v443_v8 = vrot.slane %v442_v63, 2  ;;  %v460_v9 = vmax.f32 %v416_v56, %v459_v0  ;;  %v447_v10 = vrot.slane %v414_v1, 4 }
 0x1e9   :  { %1008 = vpow2.f32 %v477_v2  ;;  %v473_v14 = vmul.f32 1.442695, %v465_v3  ;;  %v468_v15 = vsub.f32 %v412_v27, %v440_v5  ;;  %v428_v16 = vmax.f32 %v426_v61, %v427_v6 }
 0x1ea   :  { %v457_v17 = vrot.slane %v456_v7, 1  ;;  %v444_v18 = vmax.f32 %v442_v63, %v443_v8  ;;  %v461_v19 = vrot.slane %v460_v9, 2  ;;  %v448_v20 = vmax.f32 %v414_v1, %v447_v10 }
 0x1eb   :  { %1010 = vpow2.f32 %v473_v14  ;;  %v479_v21 = vmul.f32 1.442695, %v468_v15  ;;  %v466_v22 = vsub.f32 %v410_v33, %v428_v16 }
 0x1ec   :  { %v458_v24 = vmax.f32 %v456_v7, %v457_v17  ;;  %v445_v25 = vrot.slane %v444_v18, 1  ;;  %v462_v23 = vmax.f32 %v460_v9, %v461_v19  ;;  %v449_v26 = vrot.slane %v448_v20, 2 }
 0x1ed   :  { %1012 = vpow2.f32 %v479_v21  ;;  %v475_v28 = vmul.f32 1.442695, %v466_v22 }
 0x1ee   :  { %v471_v29 = vsub.f32 %v415_v40, %v458_v24  ;;  %v446_v30 = vmax.f32 %v444_v18, %v445_v25  ;;  %v463_v31 = vrot.slane %v462_v23, 1  ;;  %v450_v32 = vmax.f32 %v448_v20, %v449_v26 }
 0x1ef   :  { %1014 = vpow2.f32 %v475_v28 }
 0x1f0   :  { %v485_v27 = vmul.f32 1.442695, %v471_v29  ;;  %v469_v34 = vsub.f32 %v413_v47, %v446_v30  ;;  %v464_v35 = vmax.f32 %v462_v23, %v463_v31  ;;  %v451_v36 = vrot.slane %v450_v32, 1 }
 0x1f2   :  { %1016 = vpow2.f32 %v485_v27  ;;  %v481_v37 = vmul.f32 1.442695, %v469_v34  ;;  %v472_v38 = vsub.f32 %v416_v56, %v464_v35  ;;  %v452_v39 = vmax.f32 %v450_v32, %v451_v36 }
 0x1f4   :  { %1018 = vpow2.f32 %v481_v37  ;;  %v487_v33 = vmul.f32 1.442695, %v472_v38  ;;  %v470_v41 = vsub.f32 %v414_v1, %v452_v39 }
 0x1f6   :  { %v1229_v42 = vpop.eup %1008  ;;  %1020 = vpow2.f32 %v487_v33  ;;  %v483_v43 = vmul.f32 1.442695, %v470_v41 }
 0x1f7   :  { %v501_v40 = vrot.slane %v1229_v42, 4 }
 0x1f8   :  { %v1232_v44 = vpop.eup %1010  ;;  %1022 = vpow2.f32 %v483_v43 }
 0x1f9   :  { %v489_v45 = vrot.slane %v1232_v44, 4  ;;  %v502_v46 = vadd.f32 %v1229_v42, %v501_v40 }
 0x1fa   :  { %v1236_v47 = vpop.eup %1012 }
 0x1fb   :  { %v490_v48 = vadd.f32 %v1232_v44, %v489_v45  ;;  %v503_v49 = vrot.slane %v502_v46, 2  ;;  %v507_v50 = vrot.slane %v1236_v47, 4 }
 0x1fc   :  { %v1015_v51 = vpop.eup %1014 }
 0x1fd   :  { %v491_v52 = vrot.slane %v490_v48, 2  ;;  %v495_v53 = vrot.slane %v1015_v51, 4  ;;  %v504_v54 = vadd.f32 %v503_v49, %v502_v46  ;;  %v508_v55 = vadd.f32 %v1236_v47, %v507_v50 }
 0x1ff   :  { %v1241_v56 = vpop.eup %1016  ;;  %v492_v57 = vadd.f32 %v491_v52, %v490_v48  ;;  %v496_v58 = vadd.f32 %v1015_v51, %v495_v53  ;;  %v509_v59 = vrot.slane %v508_v55, 2  ;;  %v505_v60 = vrot.slane %v504_v54, 1 }
 0x200   :  { %v525_v61 = vrot.slane %v1241_v56, 4 }
 0x201   :  { %v1019_v62 = vpop.eup %1018  ;;  %v493_v63 = vrot.slane %v492_v57, 1  ;;  %v497_v0 = vrot.slane %v496_v58, 2  ;;  %v510_v1 = vadd.f32 %v509_v59, %v508_v55  ;;  %v506_v9 = vadd.f32 %v505_v60, %v504_v54 }
 0x202   :  { %v513_v2 = vrot.slane %v1019_v62, 4  ;;  %v526_v3 = vadd.f32 %v1241_v56, %v525_v61 }
 0x203   :  { %v1021_v5 = vpop.eup %1020  ;;  %v494_v6 = vadd.f32 %v493_v63, %v492_v57  ;;  %v498_v7 = vadd.f32 %v497_v0, %v496_v58  ;;  %v511_v8 = vrot.slane %v510_v1, 1  ;;  %v674_v57 = vunpack.c.l.bf16 %v1133_v4 }
 0x204   :  { %v514_v10 = vadd.f32 %v1019_v62, %v513_v2  ;;  %v527_v14 = vrot.slane %v526_v3, 2  ;;  %v531_v15 = vrot.slane %v1021_v5, 4  ;;  %v676_v63 = vunpack.c.l.bf16 %v1139_v11 }
 0x205   :  { %v1023_v16 = vpop.eup %1022  ;;  %1024 = vrcp.f32 %v494_v6  ;;  %v499_v17 = vrot.slane %v498_v7, 1  ;;  %v512_v24 = vadd.f32 %v511_v8, %v510_v1 }
 0x206   :  { %v515_v18 = vrot.slane %v514_v10, 2  ;;  %v519_v19 = vrot.slane %v1023_v16, 4  ;;  %v528_v20 = vadd.f32 %v527_v14, %v526_v3  ;;  %v532_v21 = vadd.f32 %v1021_v5, %v531_v15 }
 0x207   :  { %v500_v22 = vadd.f32 %v499_v17, %v498_v7  ;;  %1026 = vrcp.f32 %v506_v9  ;;  %v678_v9 = vunpack.c.l.bf16 %v1144_v12 }
 0x208   :  { %v516_v25 = vadd.f32 %v515_v18, %v514_v10  ;;  %v520_v23 = vadd.f32 %v1023_v16, %v519_v19  ;;  %v533_v26 = vrot.slane %v532_v21, 2  ;;  %v529_v28 = vrot.slane %v528_v20, 1 }
 0x209   :  { %1028 = vrcp.f32 %v500_v22 }
 0x20a   :  { %v517_v29 = vrot.slane %v516_v25, 1  ;;  %v521_v30 = vrot.slane %v520_v23, 2  ;;  %v534_v31 = vadd.f32 %v533_v26, %v532_v21  ;;  %1030 = vrcp.f32 %v512_v24 }
 0x20b   :  { %v530_v35 = vadd.f32 %v529_v28, %v528_v20 }
 0x20c   :  { %v518_v32 = vadd.f32 %v517_v29, %v516_v25  ;;  %v522_v27 = vadd.f32 %v521_v30, %v520_v23  ;;  %v535_v34 = vrot.slane %v534_v31, 1  ;;  %v680_v23 = vunpack.c.l.bf16 %v1151_v13 }
 0x20e   :  { %1032 = vrcp.f32 %v518_v32  ;;  %v523_v36 = vrot.slane %v522_v27, 1  ;;  %v536_v38 = vadd.f32 %v535_v34, %v534_v31 }
 0x20f   :  { %1034 = vrcp.f32 %v530_v35 }
 0x210   :  { %v524_v37 = vadd.f32 %v523_v36, %v522_v27 }
 0x212   :  { %v1025_v39 = vpop.eup %1024  ;;  %1036 = vrcp.f32 %v524_v37 }
 0x213   :  { %v545_v33 = vmul.f32 %v1025_v39, %v1232_v44  ;;  %1038 = vrcp.f32 %v536_v38 }
 0x214   :  { %v1027_v41 = vpop.eup %1026 }
 0x215   :  { %917 = vmatprep.mubr.f32.mxu0 %v545_v33  ;;  %v547_v46 = vmul.f32 %v1027_v41, %v1229_v42  ;;  %v675_v42 = vunpack.c.h.bf16 %v1133_v4 }
 0x216   :  { %v1029_v43 = vpop.eup %1028 }
 0x217   :  { %v546_v40 = vmul.f32 %v1029_v43, %v1015_v51  ;;  %v1031_v45 = vpop.eup %1030 }
 0x218   :  { %v548_v49 = vmul.f32 %v1031_v45, %v1236_v47  ;;  %v677_v47 = vunpack.c.h.bf16 %v1139_v11  ;;  %v681_v11 = vunpack.c.h.bf16 %v1151_v13 }
 0x219   :  { %918 = vmatmul.mubr.f32.vlgmr.msra.gmra.mxu0 %v546_v40 }
 0x21a   :  { %920 = vmatprep.mubr.f32.mxu0 %v547_v46 }
 0x21b   :  { %v1033_v48 = vpop.eup %1032 }
 0x21c   :  { %v549_v50 = vmul.f32 %v1033_v48, %v1019_v62  ;;  %v1035_v52 = vpop.eup %1034 }
 0x21d   :  { %921 = vmatmul.mubr.f32.gmra.mxu0 %v548_v49  ;;  %v551_v55 = vmul.f32 %v1035_v52, %v1241_v56 }
 0x21e   :  { %923 = vmatprep.mubr.f32.mxu1 %v549_v50 }
 0x21f   :  { %v1037_v53 = vpop.eup %1036 }
 0x220   :  { %v550_v54 = vmul.f32 %v1037_v53, %v1023_v16  ;;  %v1039_v44 = vpop.eup %1038 }
 0x221   :  { %v552_v51 = vmul.f32 %v1039_v44, %v1021_v5  ;;  %v679_v5 = vunpack.c.h.bf16 %v1144_v12 }
 0x222   :  { %924 = vmatmul.mubr.f32.vlgmr.msra.gmra.mxu1 %v550_v54 }
 0x223   :  { %926 = vmatprep.mubr.f32.mxu1 %v551_v55 }
 0x226   :  { %927 = vmatmul.mubr.f32.gmra.mxu1 %v552_v51 }
 0x2d9   :  { %v919_v58 = vpop.f32.mrf.mxu0 }
 0x2da   :  { %v683_v59 = vmul.f32 %v919_v58, %v675_v42 }
 0x2db   :  { %v635_v60 = vpop.f32.mrf.mxu0 }
 0x2dc   :  { %v696_v61 = vrot.slane %v683_v59, 4  ;;  %v682_v62 = vmul.f32 %v674_v57, %v635_v60 }
 0x2dd   :  { %v922_v0 = vpop.f32.mrf.mxu0 }
 0x2de   :  { %v697_v1 = vadd.f32 %v696_v61, %v683_v59  ;;  %v690_v56 = vrot.slane %v682_v62, 4  ;;  %v685_v2 = vmul.f32 %v922_v0, %v677_v47 }
 0x2df   :  { %v645_v3 = vpop.f32.mrf.mxu0 }
 0x2e0   :  { %v698_v6 = vrot.slane %v697_v1, 2  ;;  %v691_v7 = vadd.f32 %v690_v56, %v682_v62  ;;  %v708_v8 = vrot.slane %v685_v2, 4  ;;  %v684_v4 = vmul.f32 %v676_v63, %v645_v3 }
 0x2e2   :  { %v692_v10 = vrot.slane %v691_v7, 2  ;;  %v709_v14 = vadd.f32 %v708_v8, %v685_v2  ;;  %v702_v15 = vrot.slane %v684_v4, 4  ;;  %v925_v16 = vpop.f32.mrf.mxu1  ;;  %v699_v18 = vadd.f32 %v698_v6, %v697_v1 }
 0x2e3   :  { %v687_v17 = vmul.f32 %v925_v16, %v679_v5 }
 0x2e4   :  { %v693_v19 = vadd.f32 %v692_v10, %v691_v7  ;;  %v710_v20 = vrot.slane %v709_v14, 2  ;;  %v703_v21 = vadd.f32 %v702_v15, %v684_v4  ;;  %v655_v22 = vpop.f32.mrf.mxu1  ;;  %v700_v32 = vrot.slane %v699_v18, 1 }
 0x2e5   :  { %v720_v24 = vrot.slane %v687_v17, 4  ;;  %v686_v25 = vmul.f32 %v678_v9, %v655_v22 }
 0x2e6   :  { %v704_v26 = vrot.slane %v703_v21, 2  ;;  %v928_v28 = vpop.f32.mrf.mxu1  ;;  %v694_v29 = vrot.slane %v693_v19, 1  ;;  %v711_v27 = vadd.f32 %v710_v20, %v709_v14  ;;  %v701_v45 = vadd.f32 %v700_v32, %v699_v18 }
 0x2e7   :  { %v721_v12 = vadd.f32 %v720_v24, %v687_v17  ;;  %v714_v30 = vrot.slane %v686_v25, 4  ;;  %v689_v31 = vmul.f32 %v928_v28, %v681_v11 }
 0x2e8   :  { %v705_v34 = vadd.f32 %v704_v26, %v703_v21  ;;  %v665_v35 = vpop.f32.mrf.mxu1  ;;  %v695_v41 = vadd.f32 %v694_v29, %v693_v19  ;;  %v712_v46 = vrot.slane %v711_v27, 1 }
 0x2e9   :  { %v722_v36 = vrot.slane %v721_v12, 2  ;;  %v715_v37 = vadd.f32 %v714_v30, %v686_v25  ;;  %v732_v38 = vrot.slane %v689_v31, 4  ;;  %v688_v39 = vmul.f32 %v680_v23, %v665_v35 }
 0x2ea   :  { %v706_v33 = vrot.slane %v705_v34, 1  ;;  %v747_v54 = vsel %vm746_vm0, %v701_v45, %v695_v41  ;;  %v713_v57 = vadd.f32 %v712_v46, %v711_v27 }
 0x2eb   :  { %v716_v43 = vrot.slane %v715_v37, 2  ;;  %v733_v40 = vadd.f32 %v732_v38, %v689_v31  ;;  %v726_v13 = vrot.slane %v688_v39, 4  ;;  %v723_v49 = vadd.f32 %v722_v36, %v721_v12 }
 0x2ec   :  { %v707_v48 = vadd.f32 %v706_v33, %v705_v34 }
 0x2ed   :  { %v717_v50 = vadd.f32 %v716_v43, %v715_v37  ;;  %v734_v52 = vrot.slane %v733_v40, 2  ;;  %v727_v53 = vadd.f32 %v726_v13, %v688_v39  ;;  %v724_v58 = vrot.slane %v723_v49, 1 }
 0x2ee   :  { %v749_v51 = vsel %vm748_vm1, %v707_v48, %v747_v54 }
 0x2ef   :  { %v718_v44 = vrot.slane %v717_v50, 1  ;;  %v735_v55 = vadd.f32 %v734_v52, %v733_v40  ;;  %v728_v42 = vrot.slane %v727_v53, 2  ;;  %v751_v60 = vsel %vm750_vm2, %v713_v57, %v749_v51 }
 0x2f0   :  { %v725_v0 = vadd.f32 %v724_v58, %v723_v49 }
 0x2f1   :  { %v719_v59 = vadd.f32 %v718_v44, %v717_v50  ;;  %v729_v47 = vadd.f32 %v728_v42, %v727_v53  ;;  %v736_v61 = vrot.slane %v735_v55, 1 }
 0x2f3   :  { %v753_v62 = vsel %vm752_vm3, %v719_v59, %v751_v60  ;;  %v730_v63 = vrot.slane %v729_v47, 1  ;;  %v737_v56 = vadd.f32 %v736_v61, %v735_v55 }
 0x2f4   :  { %v755_v2 = vsel %vm754_vm4, %v725_v0, %v753_v62 }
 0x2f5   :  { %v731_v1 = vadd.f32 %v730_v63, %v729_v47 }
 0x2f7   :  { %v757_v3 = vsel %vm756_vm5, %v731_v1, %v755_v2 }
 0x2f8   :  { %v759_v5 = vsel %vm758_vm6, %v737_v56, %v757_v3 }
 0x2f9   :  { %761 = vst [vmem:[%s1266_s6] sm:$0xff] %v759_v5 }
 0x2fa   :  { %766 = vsyncpa [#allocation3], 1 }
 0x2fb   :  { %767 = vsyncpa [#allocation5], 1 }

</bundles_post_ra>
